<compile_context>
chip_gen: v6e
topology: v6e:2x2x1
jax: 0.10.0
libtpu: 0.0.40
codegen_flags: <defaults>
</compile_context>

<pallas_src>
import jax
import jax.numpy as jnp
import numpy as np
from jax.experimental import pallas as pl
from jax.experimental.pallas import tpu as pltpu


def affine_coupling_kernel(h_ref, p_ref, w1_ref, w2_ref, bias_ref, hout_ref, ld_ref):
    nsq2 = h_ref.shape[1]
    L = h_ref.shape[2]
    nsq = nsq2 // 2
    ncha = w1_ref.shape[0]
    kw = w2_ref.shape[0]
    pad = kw // 2
    R = ncha // nsq

    h_all = h_ref[0]                       # (2*nsq, L)
    h1 = h_all[:nsq]                       # first half: passthrough / conv input
    h2 = h_all[nsq:]                       # second half: gets the affine transform
    p = p_ref[0]                           # (ncha, kw+1) adaptive taps + adaptive bias
    bias = bias_ref[...]                   # (ncha + 2*nsq, 1) packed b1 | b2
    b1c = bias[:ncha]                      # (ncha, 1)
    b2c = bias[ncha:]                      # (2*nsq, 1)

    # ---- 'same'-pad shift helper with boundary masks hoisted out of the tap loops ----
    lane = jax.lax.broadcasted_iota(jnp.int32, (1, L), 1)
    masks = {}
    for k in range(kw):
        d = k - pad
        if d != 0:
            masks[d] = jnp.logical_and(lane + d >= 0, lane + d < L)

    def shifted(x, d):
        # out[..., t] = x[..., t + d], zero padded at the boundaries
        if d == 0:
            return x
        r = pltpu.roll(x, shift=(-d) % L, axis=x.ndim - 1)
        return jnp.where(masks[d], r, 0.0)

    # ---- per-sample grouped conv1d (groups=nsq, R outputs/group, 'same' padding) ----
    # Channel order was permuted at init (row c' = r*nsq + g uses input group g), so the
    # replication is a plain leading-dim tile followed by an aligned sublane flatten.
    h1rep = jnp.broadcast_to(h1[None, :, :], (R, nsq, L)).reshape(ncha, L)
    y1 = p[:, kw:kw + 1] + p[:, 0:1] * shifted(h1rep, -pad)      # bias + first tap
    for k in range(1, kw):
        y1 = y1 + p[:, k:k + 1] * shifted(h1rep, k - pad)

    # ---- net: ReLU -> Conv1d(ncha, ncha, 1) -> ReLU -> Conv1d(ncha, 2*nsq, kw, 'same') ----
    y1 = jnp.maximum(y1, 0.0)
    y2 = jnp.dot(w1_ref[...], y1.astype(jnp.bfloat16),
                 preferred_element_type=jnp.float32) + b1c
    y2 = jnp.maximum(y2, 0.0)
    y3 = jnp.dot(w2_ref[0], shifted(y2, -pad).astype(jnp.bfloat16),
                 preferred_element_type=jnp.float32) + b2c
    for k in range(1, kw):
        y3 = y3 + jnp.dot(w2_ref[k], shifted(y2, k - pad).astype(jnp.bfloat16),
                          preferred_element_type=jnp.float32)

    # ---- affine coupling: h2' = s * (h2 + m); h1 passes through via aliasing ----
    s = jax.nn.sigmoid(y3[:nsq] + 2.0) + 1e-7
    m = y3[nsq:]
    hout_ref[0] = (s * (h2 + m)).astype(hout_ref.dtype)

    total = jnp.sum(jnp.log(s), axis=1, keepdims=True)           # (nsq, 1)
    total = jnp.sum(total, axis=0, keepdims=True)                # (1, 1)
    ld_ref[...] = total.reshape(1, 1, 1)


def affine_coupling_forward(h, emb, kp):
    sbatch, nsq2, L = h.shape
    nsq = nsq2 // 2
    ncha = kp["W1p"].shape[0]
    kw = kp["W2r"].shape[0]

    # Hoisted adaptive Linear layers: one batched matmul produces, per sample, the kw
    # per-tap weights + the adaptive bias for every (permuted) channel, packed (ncha, kw+1).
    p_ad = jnp.dot(emb, kp["A"].T, precision=jax.lax.Precision.HIGHEST) + kp["a0"]
    p_ad = p_ad.reshape(sbatch, ncha, kw + 1)

    in_specs = [
        pl.BlockSpec((1, nsq2, L), lambda b: (b, 0, 0)),          # h (aliased to hout)
        pl.BlockSpec((1, ncha, kw + 1), lambda b: (b, 0, 0)),     # packed adaptive params
        pl.BlockSpec(kp["W1p"].shape, lambda b: (0, 0)),          # 1x1 conv weight (bf16)
        pl.BlockSpec(kp["W2r"].shape, lambda b: (0, 0, 0)),       # kw-tap conv weight (bf16)
        pl.BlockSpec(kp["bias"].shape, lambda b: (0, 0)),         # packed b1|b2
    ]
    out_specs = [
        pl.BlockSpec((1, nsq, L), lambda b: (b, 1, 0)),           # write ONLY the h2 half
        pl.BlockSpec((1, 1, 1), lambda b: (b, 0, 0)),
    ]
    out_shape = [
        jax.ShapeDtypeStruct((sbatch, nsq2, L), h.dtype),
        jax.ShapeDtypeStruct((sbatch, 1, 1), jnp.float32),
    ]

    hout, ld = pl.pallas_call(
        affine_coupling_kernel,
        out_shape=out_shape,
        grid_spec=pltpu.PrefetchScalarGridSpec(
            num_scalar_prefetch=0,
            grid=(sbatch,),
            in_specs=in_specs,
            out_specs=out_specs,
        ),
        input_output_aliases={0: 0},          # h1 half is pure passthrough, never re-written
        compiler_params=pltpu.CompilerParams(dimension_semantics=("parallel",)),
    )(h, p_ad, kp["W1p"], kp["W2r"], kp["bias"])
    return hout, ld[:, 0, 0]


def init_params(key, nsq, ncha, semb, kw=3):
    """Deterministic synthetic params with the shapes CouplingNet.__init__ defines."""
    ks = jax.random.split(key, 8)
    scale = 0.1
    Ww = jax.random.normal(ks[0], (ncha * kw, semb), jnp.float32) * scale   # adapt_w.weight
    bw = jax.random.normal(ks[1], (ncha * kw,), jnp.float32) * scale        # adapt_w.bias
    Wb = jax.random.normal(ks[2], (ncha, semb), jnp.float32) * scale        # adapt_b.weight
    bb = jax.random.normal(ks[3], (ncha,), jnp.float32) * scale             # adapt_b.bias
    W1 = jax.random.normal(ks[4], (ncha, ncha, 1), jnp.float32) * scale     # net[1] 1x1 conv
    b1 = jax.random.normal(ks[5], (ncha,), jnp.float32) * scale
    # NOTE: PyTorch zero-initializes net[-1]; small nonzero values exercise the full path.
    W2 = jax.random.normal(ks[6], (2 * nsq, ncha, kw), jnp.float32) * scale  # net[3] conv kw
    b2 = jax.random.normal(ks[7], (2 * nsq,), jnp.float32) * scale
    torch_p = dict(Ww=Ww, bw=bw, Wb=Wb, bb=bb, W1=W1, b1=b1, W2=W2, b2=b2)

    # ---- kernel repack ----
    R = ncha // nsq
    # permuted channel order c' = r*nsq + g (original c = g*R + r) -> grouped-conv input
    # replication becomes a plain leading-dim tile inside the kernel.
    perm = np.array([(cp % nsq) * R + (cp // nsq) for cp in range(ncha)], dtype=np.int64)

    # Pack adapt_w (kw taps) and adapt_b (bias) into one Linear so the wrapper does a
    # single batched matmul: (emb @ A.T + a0).reshape(sbatch, ncha, kw+1).
    Ww_r = Ww.reshape(ncha, kw, semb)[perm]                      # (ncha, kw, semb)
    bw_r = bw.reshape(ncha, kw)[perm]                            # (ncha, kw)
    A = jnp.concatenate([Ww_r, Wb[perm][:, None, :]], axis=1)    # (ncha, kw+1, semb)
    a0 = jnp.concatenate([bw_r, bb[perm][:, None]], axis=1)      # (ncha, kw+1)

    kern_p = dict(
        A=A.reshape(ncha * (kw + 1), semb),
        a0=a0.reshape(ncha * (kw + 1)),
        W1p=W1[:, :, 0][:, perm].astype(jnp.bfloat16),           # columns follow the perm
        W2r=jnp.transpose(W2, (2, 0, 1)).astype(jnp.bfloat16),   # (kw, 2*nsq, ncha)
        bias=jnp.concatenate([b1, b2]).reshape(ncha + 2 * nsq, 1),
    )
    return torch_p, kern_p


def reference_forward(h, emb, p, kw=3):
    """Plain-JAX reference mirroring the PyTorch forward exactly (f32 'highest' matmuls)."""
    hi = jax.lax.Precision.HIGHEST
    sbatch, nsq_full, L = h.shape
    nsq = nsq_full // 2
    ncha = p["Wb"].shape[0]
    pad = kw // 2
    R = ncha // nsq
    h1, h2 = h[:, :nsq, :], h[:, nsq:, :]

    w = (jnp.dot(emb, p["Ww"].T, precision=hi) + p["bw"]).reshape(sbatch, ncha, kw)
    badapt = jnp.dot(emb, p["Wb"].T, precision=hi) + p["bb"]
    h1p = jnp.pad(h1, ((0, 0), (0, 0), (pad, pad)))
    y1 = jnp.zeros((sbatch, ncha, L)) + badapt[:, :, None]
    for k in range(kw):
        seg = jnp.repeat(h1p[:, :, k:k + L], R, axis=1)
        y1 = y1 + w[:, :, k][:, :, None] * seg
    y1 = jnp.maximum(y1, 0.0)
    y2 = jnp.einsum("oc,bcl->bol", p["W1"][:, :, 0], y1, precision=hi) + p["b1"][None, :, None]
    y2 = jnp.maximum(y2, 0.0)
    y2p = jnp.pad(y2, ((0, 0), (0, 0), (pad, pad)))
    y3 = jnp.zeros((sbatch, 2 * nsq, L)) + p["b2"][None, :, None]
    for k in range(kw):
        y3 = y3 + jnp.einsum("oc,bcl->bol", p["W2"][:, :, k], y2p[:, :, k:k + L], precision=hi)
    s = jax.nn.sigmoid(y3[:, :nsq] + 2.0) + 1e-7
    m = y3[:, nsq:]
    h2n = s * (h2 + m)
    hout = jnp.concatenate([h1, h2n], axis=1)
    logdet = jnp.sum(jnp.log(s), axis=(1, 2))
    return hout, logdet


if __name__ == "__main__":
    # Small but tile-aligned demo shapes (nsq = 8 keeps sublane blocks 8-aligned).
    sbatch, nsq_full, L, ncha, semb, kw = 2, 16, 256, 32, 16, 3
    nsq = nsq_full // 2   # CouplingNet is built with nsq // 2

    key = jax.random.PRNGKey(0)
    k_h, k_e, k_p = jax.random.split(key, 3)
    h = jax.random.normal(k_h, (sbatch, nsq_full, L), jnp.float32)
    emb = jax.random.normal(k_e, (sbatch, semb), jnp.float32)
    torch_p, kern_p = init_params(k_p, nsq, ncha, semb, kw)

    # Compute the reference first: h is donated (updated in place) by the Pallas call.
    href, ldref = reference_forward(h, emb, torch_p, kw)
    href, ldref = jax.block_until_ready((href, ldref))

    fwd = jax.jit(affine_coupling_forward, donate_argnums=0)
    hout, logdet = fwd(h, emb, kern_p)
    jax.block_until_ready((hout, logdet))

    np.testing.assert_allclose(np.asarray(hout), np.asarray(href), rtol=1e-2, atol=1e-2)
    np.testing.assert_allclose(np.asarray(logdet), np.asarray(ldref), rtol=1e-2, atol=1e-2)
    print("KERNEL_OK")
</pallas_src>

<mosaic_0001>
module attributes {stable_mosaic.version = 11 : i64} {
  func.func @affine_coupling_kernel(%arg0: i32, %arg1: memref<1x16x256xf32, #tpu.memory_space<vmem>>, %arg2: memref<1x32x4xf32, #tpu.memory_space<vmem>>, %arg3: memref<32x32xbf16, #tpu.memory_space<vmem>>, %arg4: memref<3x16x32xbf16, #tpu.memory_space<vmem>>, %arg5: memref<48x1xf32, #tpu.memory_space<vmem>>, %arg6: memref<1x8x256xf32, #tpu.memory_space<vmem>>, %arg7: memref<1x1x1xf32, #tpu.memory_space<vmem>>) attributes {dimension_semantics = [#tpu.dimension_semantics<parallel>], iteration_bounds = array<i64: 2>, scalar_prefetch = 0 : i64, scratch_operands = 0 : i64, tpu.core_type = #tpu.core_type<tc>, window_params = [{transform_indices = @transform_0, window_bounds = array<i64: 1, 16, 256>}, {transform_indices = @transform_1, window_bounds = array<i64: 1, 32, 4>}, {pipeline_mode = #tpu.pipeline_mode<synchronous>, transform_indices = @transform_2, window_bounds = array<i64: 32, 32>}, {pipeline_mode = #tpu.pipeline_mode<synchronous>, transform_indices = @transform_3, window_bounds = array<i64: 3, 16, 32>}, {pipeline_mode = #tpu.pipeline_mode<synchronous>, transform_indices = @transform_4, window_bounds = array<i64: 48, 1>}, {transform_indices = @transform_5, window_bounds = array<i64: 1, 8, 256>}, {transform_indices = @transform_6, window_bounds = array<i64: 1, 1, 1>}]} {
    %c0 = arith.constant 0 : index
    %c0_0 = arith.constant 0 : index
    %c0_1 = arith.constant 0 : index
    %0 = vector.load %arg1[%c0, %c0_0, %c0_1] : memref<1x16x256xf32, #tpu.memory_space<vmem>>, vector<1x16x256xf32>
    %1 = vector.shape_cast %0 : vector<1x16x256xf32> to vector<16x256xf32>
    %2 = vector.extract_strided_slice %1 {offsets = [0, 0], sizes = [8, 256], strides = [1, 1]} : vector<16x256xf32> to vector<8x256xf32>
    %3 = vector.extract_strided_slice %1 {offsets = [8, 0], sizes = [8, 256], strides = [1, 1]} : vector<16x256xf32> to vector<8x256xf32>
    %c0_2 = arith.constant 0 : index
    %c0_3 = arith.constant 0 : index
    %c0_4 = arith.constant 0 : index
    %4 = vector.load %arg2[%c0_2, %c0_3, %c0_4] : memref<1x32x4xf32, #tpu.memory_space<vmem>>, vector<1x32x4xf32>
    %5 = vector.shape_cast %4 : vector<1x32x4xf32> to vector<32x4xf32>
    %c0_5 = arith.constant 0 : index
    %c0_6 = arith.constant 0 : index
    %6 = vector.load %arg5[%c0_5, %c0_6] : memref<48x1xf32, #tpu.memory_space<vmem>>, vector<48x1xf32>
    %7 = vector.extract_strided_slice %6 {offsets = [0, 0], sizes = [32, 1], strides = [1, 1]} : vector<48x1xf32> to vector<32x1xf32>
    %8 = vector.extract_strided_slice %6 {offsets = [32, 0], sizes = [16, 1], strides = [1, 1]} : vector<48x1xf32> to vector<16x1xf32>
    %9 = tpu.iota {dimensions = array<i32: 1>} : vector<1x256xi32>
    %c-1_i32 = arith.constant -1 : i32
    %10 = vector.broadcast %c-1_i32 : i32 to vector<1x256xi32>
    %11 = arith.addi %9, %10 : vector<1x256xi32>
    %c0_i32 = arith.constant 0 : i32
    %12 = vector.broadcast %c0_i32 : i32 to vector<1x256xi32>
    %13 = arith.cmpi sge, %11, %12 : vector<1x256xi32>
    %c-1_i32_7 = arith.constant -1 : i32
    %14 = vector.broadcast %c-1_i32_7 : i32 to vector<1x256xi32>
    %15 = arith.addi %9, %14 : vector<1x256xi32>
    %c256_i32 = arith.constant 256 : i32
    %16 = vector.broadcast %c256_i32 : i32 to vector<1x256xi32>
    %17 = arith.cmpi slt, %15, %16 : vector<1x256xi32>
    %18 = arith.andi %13, %17 : vector<1x256xi1>
    %c1_i32 = arith.constant 1 : i32
    %19 = vector.broadcast %c1_i32 : i32 to vector<1x256xi32>
    %20 = arith.addi %9, %19 : vector<1x256xi32>
    %c0_i32_8 = arith.constant 0 : i32
    %21 = vector.broadcast %c0_i32_8 : i32 to vector<1x256xi32>
    %22 = arith.cmpi sge, %20, %21 : vector<1x256xi32>
    %c1_i32_9 = arith.constant 1 : i32
    %23 = vector.broadcast %c1_i32_9 : i32 to vector<1x256xi32>
    %24 = arith.addi %9, %23 : vector<1x256xi32>
    %c256_i32_10 = arith.constant 256 : i32
    %25 = vector.broadcast %c256_i32_10 : i32 to vector<1x256xi32>
    %26 = arith.cmpi slt, %24, %25 : vector<1x256xi32>
    %27 = arith.andi %22, %26 : vector<1x256xi1>
    %28 = vector.shape_cast %2 : vector<8x256xf32> to vector<1x8x256xf32>
    %29 = vector.shape_cast %28 : vector<1x8x256xf32> to vector<1x8x256xf32>
    %30 = vector.broadcast %29 : vector<1x8x256xf32> to vector<4x8x256xf32>
    %31 = vector.shape_cast %30 : vector<4x8x256xf32> to vector<32x256xf32>
    %32 = vector.extract_strided_slice %5 {offsets = [0, 3], sizes = [32, 1], strides = [1, 1]} : vector<32x4xf32> to vector<32x1xf32>
    %33 = vector.extract_strided_slice %5 {offsets = [0, 0], sizes = [32, 1], strides = [1, 1]} : vector<32x4xf32> to vector<32x1xf32>
    %c1_i32_11 = arith.constant 1 : i32
    %34 = tpu.dynamic_rotate %31 by %c1_i32_11 dim 1 : vector<32x256xf32>, i32 -> vector<32x256xf32>
    %cst = arith.constant 0.000000e+00 : f32
    %35 = vector.shape_cast %18 : vector<1x256xi1> to vector<1x256xi1>
    %36 = vector.broadcast %35 : vector<1x256xi1> to vector<32x256xi1>
    %37 = vector.broadcast %cst : f32 to vector<32x256xf32>
    %38 = arith.select %36, %34, %37 : vector<32x256xi1>, vector<32x256xf32>
    %39 = vector.broadcast %33 : vector<32x1xf32> to vector<32x256xf32>
    %40 = arith.mulf %39, %38 : vector<32x256xf32>
    %41 = vector.broadcast %32 : vector<32x1xf32> to vector<32x256xf32>
    %42 = arith.addf %41, %40 : vector<32x256xf32>
    %43 = vector.extract_strided_slice %5 {offsets = [0, 1], sizes = [32, 1], strides = [1, 1]} : vector<32x4xf32> to vector<32x1xf32>
    %44 = vector.broadcast %43 : vector<32x1xf32> to vector<32x256xf32>
    %45 = arith.mulf %44, %31 : vector<32x256xf32>
    %46 = arith.addf %42, %45 : vector<32x256xf32>
    %47 = vector.extract_strided_slice %5 {offsets = [0, 2], sizes = [32, 1], strides = [1, 1]} : vector<32x4xf32> to vector<32x1xf32>
    %c255_i32 = arith.constant 255 : i32
    %48 = tpu.dynamic_rotate %31 by %c255_i32 dim 1 : vector<32x256xf32>, i32 -> vector<32x256xf32>
    %cst_12 = arith.constant 0.000000e+00 : f32
    %49 = vector.shape_cast %27 : vector<1x256xi1> to vector<1x256xi1>
    %50 = vector.broadcast %49 : vector<1x256xi1> to vector<32x256xi1>
    %51 = vector.broadcast %cst_12 : f32 to vector<32x256xf32>
    %52 = arith.select %50, %48, %51 : vector<32x256xi1>, vector<32x256xf32>
    %53 = vector.broadcast %47 : vector<32x1xf32> to vector<32x256xf32>
    %54 = arith.mulf %53, %52 : vector<32x256xf32>
    %55 = arith.addf %46, %54 : vector<32x256xf32>
    %cst_13 = arith.constant 0.000000e+00 : f32
    %56 = vector.broadcast %cst_13 : f32 to vector<32x256xf32>
    %57 = arith.maximumf %55, %56 : vector<32x256xf32>
    %c0_14 = arith.constant 0 : index
    %c0_15 = arith.constant 0 : index
    %58 = vector.load %arg3[%c0_14, %c0_15] : memref<32x32xbf16, #tpu.memory_space<vmem>>, vector<32x32xbf16>
    %59 = arith.truncf %57 : vector<32x256xf32> to vector<32x256xbf16>
    %cst_16 = arith.constant dense<0.000000e+00> : vector<32x256xf32>
    %60 = tpu.matmul %58, %59, %cst_16 {dimension_numbers = #tpu.dot_dimension_numbers<[1], [0], [0], [1], [0, 0, 1, 1], [], []>} : vector<32x32xbf16>, vector<32x256xbf16>, vector<32x256xf32> -> vector<32x256xf32>
    %61 = vector.broadcast %7 : vector<32x1xf32> to vector<32x256xf32>
    %62 = arith.addf %60, %61 : vector<32x256xf32>
    %cst_17 = arith.constant 0.000000e+00 : f32
    %63 = vector.broadcast %cst_17 : f32 to vector<32x256xf32>
    %64 = arith.maximumf %62, %63 : vector<32x256xf32>
    %c0_18 = arith.constant 0 : index
    %c0_19 = arith.constant 0 : index
    %c0_20 = arith.constant 0 : index
    %65 = vector.load %arg4[%c0_18, %c0_19, %c0_20] : memref<3x16x32xbf16, #tpu.memory_space<vmem>>, vector<1x16x32xbf16>
    %66 = vector.shape_cast %65 : vector<1x16x32xbf16> to vector<16x32xbf16>
    %c1_i32_21 = arith.constant 1 : i32
    %67 = tpu.dynamic_rotate %64 by %c1_i32_21 dim 1 : vector<32x256xf32>, i32 -> vector<32x256xf32>
    %cst_22 = arith.constant 0.000000e+00 : f32
    %68 = vector.shape_cast %18 : vector<1x256xi1> to vector<1x256xi1>
    %69 = vector.broadcast %68 : vector<1x256xi1> to vector<32x256xi1>
    %70 = vector.broadcast %cst_22 : f32 to vector<32x256xf32>
    %71 = arith.select %69, %67, %70 : vector<32x256xi1>, vector<32x256xf32>
    %72 = arith.truncf %71 : vector<32x256xf32> to vector<32x256xbf16>
    %cst_23 = arith.constant dense<0.000000e+00> : vector<16x256xf32>
    %73 = tpu.matmul %66, %72, %cst_23 {dimension_numbers = #tpu.dot_dimension_numbers<[1], [0], [0], [1], [0, 0, 1, 1], [], []>} : vector<16x32xbf16>, vector<32x256xbf16>, vector<16x256xf32> -> vector<16x256xf32>
    %74 = vector.broadcast %8 : vector<16x1xf32> to vector<16x256xf32>
    %75 = arith.addf %73, %74 : vector<16x256xf32>
    %c1 = arith.constant 1 : index
    %c0_24 = arith.constant 0 : index
    %c0_25 = arith.constant 0 : index
    %76 = vector.load %arg4[%c1, %c0_24, %c0_25] : memref<3x16x32xbf16, #tpu.memory_space<vmem>>, vector<1x16x32xbf16>
    %77 = vector.shape_cast %76 : vector<1x16x32xbf16> to vector<16x32xbf16>
    %78 = arith.truncf %64 : vector<32x256xf32> to vector<32x256xbf16>
    %cst_26 = arith.constant dense<0.000000e+00> : vector<16x256xf32>
    %79 = tpu.matmul %77, %78, %cst_26 {dimension_numbers = #tpu.dot_dimension_numbers<[1], [0], [0], [1], [0, 0, 1, 1], [], []>} : vector<16x32xbf16>, vector<32x256xbf16>, vector<16x256xf32> -> vector<16x256xf32>
    %80 = arith.addf %75, %79 : vector<16x256xf32>
    %c2 = arith.constant 2 : index
    %c0_27 = arith.constant 0 : index
    %c0_28 = arith.constant 0 : index
    %81 = vector.load %arg4[%c2, %c0_27, %c0_28] : memref<3x16x32xbf16, #tpu.memory_space<vmem>>, vector<1x16x32xbf16>
    %82 = vector.shape_cast %81 : vector<1x16x32xbf16> to vector<16x32xbf16>
    %c255_i32_29 = arith.constant 255 : i32
    %83 = tpu.dynamic_rotate %64 by %c255_i32_29 dim 1 : vector<32x256xf32>, i32 -> vector<32x256xf32>
    %cst_30 = arith.constant 0.000000e+00 : f32
    %84 = vector.shape_cast %27 : vector<1x256xi1> to vector<1x256xi1>
    %85 = vector.broadcast %84 : vector<1x256xi1> to vector<32x256xi1>
    %86 = vector.broadcast %cst_30 : f32 to vector<32x256xf32>
    %87 = arith.select %85, %83, %86 : vector<32x256xi1>, vector<32x256xf32>
    %88 = arith.truncf %87 : vector<32x256xf32> to vector<32x256xbf16>
    %cst_31 = arith.constant dense<0.000000e+00> : vector<16x256xf32>
    %89 = tpu.matmul %82, %88, %cst_31 {dimension_numbers = #tpu.dot_dimension_numbers<[1], [0], [0], [1], [0, 0, 1, 1], [], []>} : vector<16x32xbf16>, vector<32x256xbf16>, vector<16x256xf32> -> vector<16x256xf32>
    %90 = arith.addf %80, %89 : vector<16x256xf32>
    %91 = vector.extract_strided_slice %90 {offsets = [0, 0], sizes = [8, 256], strides = [1, 1]} : vector<16x256xf32> to vector<8x256xf32>
    %cst_32 = arith.constant 2.000000e+00 : f32
    %92 = vector.broadcast %cst_32 : f32 to vector<8x256xf32>
    %93 = arith.addf %91, %92 : vector<8x256xf32>
    %94 = arith.negf %93 : vector<8x256xf32>
    %95 = math.exp %94 : vector<8x256xf32>
    %cst_33 = arith.constant 1.000000e+00 : f32
    %96 = vector.broadcast %cst_33 : f32 to vector<8x256xf32>
    %97 = arith.addf %96, %95 : vector<8x256xf32>
    %98 = arith.divf %96, %97 : vector<8x256xf32>
    %cst_34 = arith.constant 1.000000e-07 : f32
    %99 = vector.broadcast %cst_34 : f32 to vector<8x256xf32>
    %100 = arith.addf %98, %99 : vector<8x256xf32>
    %101 = vector.extract_strided_slice %90 {offsets = [8, 0], sizes = [8, 256], strides = [1, 1]} : vector<16x256xf32> to vector<8x256xf32>
    %102 = arith.addf %3, %101 : vector<8x256xf32>
    %103 = arith.mulf %100, %102 : vector<8x256xf32>
    %c0_35 = arith.constant 0 : index
    %c0_36 = arith.constant 0 : index
    %c0_37 = arith.constant 0 : index
    %104 = vector.load %arg6[%c0_35, %c0_36, %c0_37] : memref<1x8x256xf32, #tpu.memory_space<vmem>>, vector<1x8x256xf32>
    %105 = vector.shape_cast %104 : vector<1x8x256xf32> to vector<8x256xf32>
    %106 = vector.shape_cast %103 : vector<8x256xf32> to vector<1x8x256xf32>
    tpu.vector_store %arg6[%c0_35, %c0_36, %c0_37], %106 {strides = array<i32>} : memref<1x8x256xf32, #tpu.memory_space<vmem>>, vector<1x8x256xf32>,
    %107 = math.log %100 : vector<8x256xf32>
    %cst_38 = arith.constant dense<0.000000e+00> : vector<8xf32>
    %108 = vector.multi_reduction <add>, %107, %cst_38 [1] : vector<8x256xf32> to vector<8xf32>
    %109 = vector.shape_cast %108 : vector<8xf32> to vector<8x1xf32>
    %cst_39 = arith.constant dense<0.000000e+00> : vector<1xf32>
    %110 = vector.multi_reduction <add>, %109, %cst_39 [0] : vector<8x1xf32> to vector<1xf32>
    %111 = vector.shape_cast %110 : vector<1xf32> to vector<1x1xf32>
    %112 = vector.shape_cast %111 : vector<1x1xf32> to vector<1x1x1xf32>
    %c0_40 = arith.constant 0 : index
    %c0_41 = arith.constant 0 : index
    %c0_42 = arith.constant 0 : index
    %113 = vector.load %arg7[%c0_40, %c0_41, %c0_42] : memref<1x1x1xf32, #tpu.memory_space<vmem>>, vector<1x1x1xf32>
    tpu.vector_store %arg7[%c0_40, %c0_41, %c0_42], %112 {strides = array<i32>} : memref<1x1x1xf32, #tpu.memory_space<vmem>>, vector<1x1x1xf32>,
    return
  }
  func.func @transform_0(%arg0: i32) -> (i32, i32, i32) {
    %c0_i32 = arith.constant 0 : i32
    %c0_i32_0 = arith.constant 0 : i32
    %c0_i32_1 = arith.constant 0 : i32
    return %arg0, %c0_i32, %c0_i32_0 : i32, i32, i32
  }
  func.func @transform_1(%arg0: i32) -> (i32, i32, i32) {
    %c0_i32 = arith.constant 0 : i32
    %c0_i32_0 = arith.constant 0 : i32
    %c0_i32_1 = arith.constant 0 : i32
    return %arg0, %c0_i32, %c0_i32_0 : i32, i32, i32
  }
  func.func @transform_2(%arg0: i32) -> (i32, i32) {
    %c0_i32 = arith.constant 0 : i32
    %c0_i32_0 = arith.constant 0 : i32
    %c0_i32_1 = arith.constant 0 : i32
    return %c0_i32, %c0_i32_0 : i32, i32
  }
  func.func @transform_3(%arg0: i32) -> (i32, i32, i32) {
    %c0_i32 = arith.constant 0 : i32
    %c0_i32_0 = arith.constant 0 : i32
    %c0_i32_1 = arith.constant 0 : i32
    %c0_i32_2 = arith.constant 0 : i32
    return %c0_i32, %c0_i32_0, %c0_i32_1 : i32, i32, i32
  }
  func.func @transform_4(%arg0: i32) -> (i32, i32) {
    %c0_i32 = arith.constant 0 : i32
    %c0_i32_0 = arith.constant 0 : i32
    %c0_i32_1 = arith.constant 0 : i32
    return %c0_i32, %c0_i32_0 : i32, i32
  }
  func.func @transform_5(%arg0: i32) -> (i32, i32, i32) {
    %c1_i32 = arith.constant 1 : i32
    %c0_i32 = arith.constant 0 : i32
    %c0_i32_0 = arith.constant 0 : i32
    return %arg0, %c1_i32, %c0_i32 : i32, i32, i32
  }
  func.func @transform_6(%arg0: i32) -> (i32, i32, i32) {
    %c0_i32 = arith.constant 0 : i32
    %c0_i32_0 = arith.constant 0 : i32
    %c0_i32_1 = arith.constant 0 : i32
    return %arg0, %c0_i32, %c0_i32_0 : i32, i32, i32
  }
}

</mosaic_0001>

<bundles_post_ra>
// kernel: affine_coupling_forward.1
= control target key start
LH: loop header
LB: loop body
LE: loop exit
PB: predicated region body
PF: predicated region fallthrough
CT: control target
= control target key end

     0   :  { %s1146_s21 = smov 0   ;;  %s1346_s0 = inlined_call_operand.vmem [shape: f32[2,16,256], index: 0, kind: input, shape index: {}, may-alias: {0,5}]   ;;  %s1347_s1 = inlined_call_operand.vmem [shape: f32[2,32,4], index: 1, kind: input, shape index: {}]   ;;  %s1348_s2 = inlined_call_operand.vmem [shape: bf16[32,32], index: 2, kind: input, shape index: {}]   ;;  %s1349_s3 = inlined_call_operand.vmem [shape: bf16[3,16,32], index: 3, kind: input, shape index: {}]   ;;  %s1350_s4 = inlined_call_operand.vmem [shape: f32[48,1], index: 4, kind: input, shape index: {}]   ;;  %s1351_s5 = inlined_call_operand.vmem [shape: f32[2,16,256], index: 5, kind: output, shape index: {0}, may-alias: {0,5}]   ;;  %s1352_s6 = inlined_call_operand.vmem [shape: f32[2,1,1], index: 6, kind: output, shape index: {1}]  }
   0x1 LB: > { %s967_s22 = sadd.s32 4294967295, %s1103_s21   ;;  %p971_p0 = scmp.ge.s32.totalorder %s1103_s21, 1  ;;  %s1103_s21 = sphi %s1146_s21, %s17_s21  }
   0x2   : > { %p225_p1 = scmp.lt.s32.totalorder %s1103_s21, 3 }
   0x4   : > { %p226_p2 = pnand %p971_p0, %p225_p1 }
   0x5   : > { %p264_p3 = scmp.lt.s32.totalorder (!%p226_p2), %s967_s22, 1  ;;  %s1108_s30 = smov (!%p226_p2), 1  }
   0x6   : > { %229 = sbr.rel (%p226_p2) target bundleno = 956 (0x3bc), region = 40  ;;  %s1110_s7 = smov (!%p226_p2), 127  }
   0xb   : > { %v1105_v0 = vmov 3   ;;  %v1106_v1 = vmov 0   ;;  %s1358_s22 = smov (!%p264_p3, %s967_s22), 1  ;;  %v1107_v5 = vmov 1   ;;  %v1109_v9 = vmov 2   ;;  %v294_v10 = vld [vmem:[%s1350_s4 + $0x10] sm:$0xff] }
   0xc   : > { %1028 = vset.pattern.permute.xlu1 %v1105_v0  ;;  %1027 = vset.pattern.permute.xlu0 %v1106_v1  ;;  %s1160_s23 = sshll.u32 %s1358_s22, 5  ;;  %v295_v11 = vld [vmem:[%s1350_s4 + $0x18] sm:$0xff]  ;;  %v292_v12 = vld [vmem:[%s1350_s4] sm:$0xff]  ;;  %v293_v13 = vld [vmem:[%s1350_s4 + $0x8] sm:$0xff]  ;;  %v298_v22 = vlaneseq  ;;  %vm505_vm4 = vcmask 261120   ;;  %s282_s13 = scalar_lea.vmem %s1352_s6, %s1358_s22  ;;  %vm863_vm7 = vcmask 0  }
   0xd   : > { %544 = vmatprep.mubr.bf16.mxu0 %v1106_v1  ;;  %661 = vmatprep.mubr.bf16.mxu1 %v1106_v1  ;;  %s273_s26 = scalar_lea.vmem %s1347_s1, %s1160_s23  ;;  %s1170_s29 = scalar_lea.vmem %s1346_s0, %s1160_s23 }
   0xe   : > { %v290_v2 = vld [vmem:[%s273_s26 + $0x10] sm:$0xff]  ;;  %v291_v3 = vld [vmem:[%s273_s26 + $0x18] sm:$0xff]  ;;  %v1173_v4 = vld [vmem:[%s1170_s29 + $0x8] sm:$0xff]  ;;  %v1201_v23 = vand.u32 127, %v298_v22  ;;  %s919_s12 = scalar_lea.vmem %s1351_s5, %s1160_s23 }
   0xf   : > { %367 = vperm.xlu1 %1028, %v290_v2   ;;  %342 = vperm.xlu0 %1027, %v290_v2   ;;  %v289_v6 = vld [vmem:[%s273_s26 + $0x8] sm:$0xff]  ;;  %v1178_v7 = vld [vmem:[%s1170_s29] sm:$0xff] }
  0x10   : > { %v288_v8 = vld [vmem:[%s273_s26] sm:$0xff]  ;;  %v1204_v26 = vadd.s32 4294967295, %v1201_v23  ;;  %vm321_vm0 = vcmp.lt.s32.totalorder %v1201_v23, 1  ;;  %v300_v32 = vadd.s32 128, %v1201_v23  ;;  %vm418_vm2 = vcmp.lt.s32.totalorder %v1201_v23, 127  ;;  %v1084_v23 = vld [vmem:[%s1349_s3 + $0x10] sm:$0xff]  }
  0x12   : > { %vm303_vm1 = vcmp.ge.s32.totalorder %v1204_v26, 0  ;;  %v1215_v38 = vadd.s32 1, %v300_v32 }
  0x13   : > { %371 = vperm.xlu1 %1028, %v291_v3   ;;  %347 = vperm.xlu0 %1027, %v291_v3   ;;  %vm1274_vm5 = vmpackc.low %vm303_vm1, %vm303_vm1 }
  0x14   : > { %vm314_vm3 = vcmp.lt.s32.totalorder %v1215_v38, 256 }
  0x15   : > { %vm1302_vm6 = vmpackc.low %vm314_vm3, %vm314_vm3 }
  0x17   : > { %1029 = vset.pattern.permute.xlu1 %v1107_v5  ;;  %319 = vrot.lane.b32.xlu0 %v1173_v4, %s1108_s30 }
  0x18   : > { %395 = vperm.xlu1 %1029, %v291_v3  }
  0x1b   : > { %337 = vperm.xlu0 %1027, %v289_v6  }
  0x1c   : > { %317 = vrot.lane.b32.xlu1 %v1178_v7, %s1108_s30 }
  0x1d   : > { %1030 = vset.pattern.permute.xlu1 %v1106_v1 }
  0x1f   : > { %1032 = vset.pattern.permute.xlu0 %v1105_v0 }
  0x20   : > { %359 = vperm.xlu0 %1032, %v288_v8   ;;  %332 = vperm.xlu1 %1030, %v288_v8  }
  0x24   : > { %1033 = vset.pattern.permute.xlu0 %v1107_v5  ;;  %1031 = vset.pattern.permute.xlu1 %v1109_v9 }
  0x25   : > { %391 = vperm.xlu0 %1033, %v290_v2   ;;  %436 = vperm.xlu1 %1031, %v290_v2  }
  0x29   : > { %440 = vperm.xlu1 %1031, %v291_v3   ;;  %387 = vperm.xlu0 %1033, %v289_v6  }
  0x2d   : > { %1034 = vset.pattern.permute.xlu1 %v1105_v0  ;;  %1036 = vset.pattern.permute.xlu0 %v1109_v9 }
  0x2e   : > { %363 = vperm.xlu1 %1034, %v289_v6   ;;  %428 = vperm.xlu0 %1036, %v288_v8  }
  0x32   : > { %1035 = vset.pattern.permute.xlu1 %v1107_v5  ;;  %1039 = vset.pattern.permute.xlu0 %v1106_v1 }
  0x33   : > { %383 = vperm.xlu1 %1035, %v288_v8   ;;  %492 = vperm.xlu0 %1039, %v295_v11  }
  0x37   : > { %414 = vrot.lane.b32.xlu1 %v1178_v7, %s1110_s7 }
  0x38   : > { %1037 = vset.pattern.permute.xlu1 %v1109_v9 }
  0x3b   : > { %416 = vrot.lane.b32.xlu1 %v1173_v4, %s1110_s7 }
  0x3f   : > { %432 = vperm.xlu1 %1037, %v289_v6  }
  0x43   : > { %1038 = vset.pattern.permute.xlu1 %v1106_v1 }
  0x44   : > { %487 = vperm.xlu1 %1038, %v294_v10  }
  0x48   : > { %477 = vperm.xlu1 %1038, %v292_v12  }
  0x4c   : > { %482 = vperm.xlu1 %1038, %v293_v13  }
  0x8a   : > { %v368_v14 = vpop.permute.xlu1 %367  ;;  %v343_v15 = vpop.permute.xlu0 %342 }
  0x8e   : > { %v372_v16 = vpop.permute.xlu1 %371  ;;  %v348_v18 = vpop.permute.xlu0 %347 }
  0x92   : > { %v320_v20 = vpop.permute.xlu0 %319 }
  0x93   : > { %v396_v17 = vpop.permute.xlu1 %395 }
  0x94   : > { %v405_v49 = vmul.f32 %v396_v17, %v1173_v4  ;;  %v404_v53 = vmul.f32 %v396_v17, %v1178_v7 }
  0x96   : > { %v338_v24 = vpop.permute.xlu0 %337 }
  0x97   : > { %v318_v19 = vpop.permute.xlu1 %317 }
  0x98   : > { %v323_v29 = vsel %vm321_vm0, %v320_v20, %v318_v19  ;;  %v322_v31 = vsel %vm321_vm0, %v318_v19, %v320_v20 }
  0x99   : > { %v328_v33 = vsel %vm303_vm1, %v323_v29, 0.0  ;;  %v357_v35 = vmul.f32 %v348_v18, %v322_v31  ;;  %v355_v40 = vmul.f32 %v343_v15, %v322_v31  ;;  %v353_v54 = vmul.f32 %v338_v24, %v322_v31 }
  0x9a   : > { %v356_v36 = vmul.f32 %v348_v18, %v328_v33  ;;  %v354_v39 = vmul.f32 %v343_v15, %v328_v33  ;;  %v352_v42 = vmul.f32 %v338_v24, %v328_v33 }
  0x9b   : > { %v333_v21 = vpop.permute.xlu1 %332  ;;  %v360_v28 = vpop.permute.xlu0 %359  ;;  %v381_v45 = vadd.f32 %v372_v16, %v357_v35  ;;  %v379_v56 = vadd.f32 %v368_v14, %v355_v40 }
  0x9c   : > { %v350_v43 = vmul.f32 %v333_v21, %v328_v33  ;;  %v351_v44 = vmul.f32 %v333_v21, %v322_v31  ;;  %v380_v48 = vadd.f32 %v372_v16, %v356_v36  ;;  %v378_v55 = vadd.f32 %v368_v14, %v354_v39 }
  0x9d   : > { %v413_v60 = vadd.f32 %v405_v49, %v381_v45  ;;  %v1080_v45 = vld [vmem:[%s1348_s2] sm:$0xff]  }
  0x9e   : > { %v374_v57 = vadd.f32 %v360_v28, %v350_v43  ;;  %v375_v58 = vadd.f32 %v360_v28, %v351_v44  ;;  %v412_v3 = vadd.f32 %v404_v53, %v380_v48 }
  0xa0   : > { %v437_v25 = vpop.permute.xlu1 %436  ;;  %v392_v34 = vpop.permute.xlu0 %391 }
  0xa1   : > { %v402_v46 = vmul.f32 %v392_v34, %v1178_v7  ;;  %v403_v50 = vmul.f32 %v392_v34, %v1173_v4 }
  0xa3   : > { %v410_v61 = vadd.f32 %v402_v46, %v378_v55  ;;  %v411_v5 = vadd.f32 %v403_v50, %v379_v56  ;;  %v1081_v46 = vld [vmem:[%s1348_s2 + $0x8] sm:$0xff]  }
  0xa4   : > { %v441_v27 = vpop.permute.xlu1 %440  ;;  %v388_v41 = vpop.permute.xlu0 %387 }
  0xa5   : > { %v400_v51 = vmul.f32 %v388_v41, %v1178_v7  ;;  %v401_v62 = vmul.f32 %v388_v41, %v1173_v4 }
  0xa9   : > { %v364_v30 = vpop.permute.xlu1 %363  ;;  %v429_v2 = vpop.permute.xlu0 %428 }
  0xaa   : > { %v376_v52 = vadd.f32 %v364_v30, %v352_v42  ;;  %v377_v63 = vadd.f32 %v364_v30, %v353_v54 }
  0xac   : > { %v408_v6 = vadd.f32 %v400_v51, %v376_v52  ;;  %v409_v17 = vadd.f32 %v401_v62, %v377_v63 }
  0xae   : > { %v384_v37 = vpop.permute.xlu1 %383 }
  0xaf   : > { %v399_v59 = vmul.f32 %v384_v37, %v1173_v4  ;;  %v398_v10 = vmul.f32 %v384_v37, %v1178_v7 }
  0xb1   : > { %v407_v4 = vadd.f32 %v399_v59, %v375_v58  ;;  %v406_v30 = vadd.f32 %v398_v10, %v374_v57 }
  0xb2   : > { %v415_v47 = vpop.permute.xlu1 %414 }
  0xb6   : > { %v417_v0 = vpop.permute.xlu1 %416 }
  0xb7   : > { %v419_v8 = vsel %vm418_vm2, %v415_v47, %v417_v0  ;;  %v420_v9 = vsel %vm418_vm2, %v417_v0, %v415_v47 }
  0xb8   : > { %v426_v11 = vsel %vm314_vm3, %v420_v9, 0.0  ;;  %v447_v12 = vmul.f32 %v437_v25, %v419_v8  ;;  %v449_v13 = vmul.f32 %v441_v27, %v419_v8  ;;  %v443_v18 = vmul.f32 %v429_v2, %v419_v8 }
  0xb9   : > { %v444_v14 = vmul.f32 %v429_v2, %v426_v11  ;;  %v448_v15 = vmul.f32 %v437_v25, %v426_v11  ;;  %v450_v16 = vmul.f32 %v441_v27, %v426_v11  ;;  %v493_v2 = vpop.permute.xlu0 %492 }
  0xba   : > { %v433_v19 = vpop.permute.xlu1 %432  ;;  %v455_v20 = vadd.f32 %v447_v12, %v410_v61  ;;  %v457_v21 = vadd.f32 %v449_v13, %v412_v3  ;;  %v451_v37 = vadd.f32 %v443_v18, %v406_v30 }
  0xbb   : > { %v452_v22 = vadd.f32 %v444_v14, %v407_v4  ;;  %v445_v24 = vmul.f32 %v433_v19, %v419_v8  ;;  %v446_v28 = vmul.f32 %v433_v19, %v426_v11  ;;  %v456_v29 = vadd.f32 %v448_v15, %v411_v5 }
  0xbc   : > { %v458_v7 = vadd.f32 %v450_v16, %v413_v60  ;;  %v463_v31 = vmax.f32 %v455_v20, 0.0  ;;  %v465_v35 = vmax.f32 %v457_v21, 0.0  ;;  %v459_v43 = vmax.f32 %v451_v37, 0.0  ;;  %v296_v21 = vld [vmem:[%s1350_s4 + $0x20] sm:$0xff] }
  0xbd   : > { %v453_v32 = vadd.f32 %v445_v24, %v408_v6  ;;  %v454_v33 = vadd.f32 %v446_v28, %v409_v17  ;;  %v464_v34 = vmax.f32 %v456_v29, 0.0  ;;  %v460_v25 = vmax.f32 %v452_v22, 0.0  ;;  %v297_v22 = vld [vmem:[%s1350_s4 + $0x28] sm:$0xff] }
  0xbe   : > { %v466_v36 = vmax.f32 %v458_v7, 0.0  ;;  %v473_v41 = vpack.c.bf16 %v465_v35, %v463_v31 }
  0xbf   : > { %v462_v27 = vmax.f32 %v454_v33, 0.0  ;;  %v461_v40 = vmax.f32 %v453_v32, 0.0  ;;  %v488_v47 = vpop.permute.xlu1 %487 }
  0xc0   : > { %v474_v39 = vpack.c.bf16 %v466_v36, %v464_v34 }
  0xc1   : > { %v472_v42 = vpack.c.bf16 %v462_v27, %v460_v25  ;;  %v471_v44 = vpack.c.bf16 %v461_v40, %v459_v43 }
  0xc2   : > { %524 = vmatprep.subr.bf16.mxu0 %v474_v39 }
  0xc3   : > { %525 = vmatpush1.bf16.msra.mxu0 %v473_v41  ;;  %v478_v48 = vpop.permute.xlu1 %477 }
  0xc4   : > { %526 = vmatprep.subr.bf16.mxu0 %v472_v42 }
  0xc7   : > { %527 = vmatpush1.bf16.msra.mxu0 %v471_v44  ;;  %v483_v51 = vpop.permute.xlu1 %482 }
  0xca   : > { %980 = vmatmul.mubr.msk.bf16.vlgmr.msra.gmra.mxu0 %vm505_vm4, %v1080_v45 }
  0xcb   : > { %554 = vmatprep.mubr.bf16.mxu0 %v1106_v1 }
  0xd2   : > { %981 = vmatmul.mubr.msk.bf16.gmra.mxu0 %vm505_vm4, %v1081_v46 }
  0xd3   : > { %813 = vmatprep.mubr.bf16.mxu0 %v1106_v1 }
 0x18a   : > { %v546_v49 = vpop.f32.mrf.mxu0 }
 0x18b   : > { %v547_v52 = vadd.f32 %v546_v49, %v478_v48 }
 0x18c   : > { %v548_v50 = vpop.f32.mrf.mxu0 }
 0x18d   : > { %v549_v55 = vadd.f32 %v548_v50, %v478_v48  ;;  %v565_v57 = vmax.f32 %v547_v52, 0.0 }
 0x18e   : > { %v550_v53 = vpop.f32.mrf.mxu0 }
 0x18f   : > { %v551_v54 = vadd.f32 %v550_v53, %v483_v51  ;;  %v566_v63 = vmax.f32 %v549_v55, 0.0 }
 0x190   : > { %v552_v56 = vpop.f32.mrf.mxu0 }
 0x191   : > { %v567_v58 = vmax.f32 %v551_v54, 0.0  ;;  %v553_v59 = vadd.f32 %v552_v56, %v483_v51 }
 0x192   : > { %v556_v60 = vpop.f32.mrf.mxu0 }
 0x193   : > { %v1243_v61 = vpack.c.bf16 %v567_v58, %v565_v57  ;;  %v568_v62 = vmax.f32 %v553_v59, 0.0  ;;  %v557_v3 = vadd.f32 %v556_v60, %v488_v47  ;;  %v1045_v19 = vpack.i.bf16 %v567_v58, %v565_v57  ;;  %v1082_v60 = vld [vmem:[%s1349_s3] sm:$0xff]  }
 0x194   : > { %v558_v0 = vpop.f32.mrf.mxu0 }
 0x195   : > { %v1245_v6 = vpack.c.bf16 %v568_v62, %v566_v63  ;;  %v559_v8 = vadd.f32 %v558_v0, %v488_v47  ;;  %v569_v11 = vmax.f32 %v557_v3, 0.0  ;;  %v1055_v20 = vpack.i.bf16 %v568_v62, %v566_v63 }
 0x196   : > { %v560_v5 = vpop.f32.mrf.mxu0 }
 0x197   : > { %v561_v9 = vadd.f32 %v560_v5, %v493_v2  ;;  %v570_v4 = vmax.f32 %v559_v8, 0.0 }
 0x198   : > { %v562_v10 = vpop.f32.mrf.mxu0 }
 0x199   : > { %v571_v12 = vmax.f32 %v561_v9, 0.0  ;;  %v563_v13 = vadd.f32 %v562_v10, %v493_v2 }
 0x19b   : > { %v1247_v14 = vpack.c.bf16 %v571_v12, %v569_v11  ;;  %v572_v15 = vmax.f32 %v563_v13, 0.0  ;;  %v1040_v16 = vpack.i.bf16 %v571_v12, %v569_v11 }
 0x19d   : > { %1041 = vrot.lane.b32.xlu0 %v1040_v16, %s1108_s30  ;;  %v1050_v17 = vpack.i.bf16 %v572_v15, %v570_v4  ;;  %v678_v18 = vpack.c.bf16 %v572_v15, %v570_v4  ;;  %v1083_v15 = vld [vmem:[%s1349_s3 + $0x8] sm:$0xff]  }
 0x19f   : > { %1051 = vrot.lane.b32.xlu1 %v1050_v17, %s1108_s30 }
 0x1a1   : > { %1046 = vrot.lane.b32.xlu0 %v1045_v19, %s1108_s30 }
 0x1a3   : > { %1056 = vrot.lane.b32.xlu1 %v1055_v20, %s1108_s30 }
 0x1a5   : > { %1061 = vrot.lane.b32.xlu0 %v1040_v16, %s1110_s7 }
 0x1a7   : > { %1071 = vrot.lane.b32.xlu1 %v1050_v17, %s1110_s7 }
 0x1a9   : > { %1066 = vrot.lane.b32.xlu0 %v1045_v19, %s1110_s7 }
 0x1ab   : > { %1076 = vrot.lane.b32.xlu1 %v1055_v20, %s1110_s7 }
 0x1ad   : > { %613 = vperm.xlu0 %1039, %v296_v21  }
 0x1b1   : > { %618 = vperm.xlu0 %1039, %v297_v22  }
 0x20f   : > { %v1042_v24 = vpop.permute.xlu0 %1041 }
 0x210   : > { %v1044_v29 = vunpack.i.h.bf16 %v1042_v24  ;;  %v1043_v30 = vunpack.i.l.bf16 %v1042_v24 }
 0x211   : > { %v1052_v28 = vpop.permute.xlu1 %1051 }
 0x212   : > { %v1054_v7 = vunpack.i.h.bf16 %v1052_v28  ;;  %v1053_v31 = vunpack.i.l.bf16 %v1052_v28 }
 0x213   : > { %v1047_v32 = vpop.permute.xlu0 %1046 }
 0x214   : > { %v593_v33 = vsel %vm321_vm0, %v1043_v30, %v1053_v31  ;;  %v594_v34 = vsel %vm321_vm0, %v1044_v29, %v1054_v7  ;;  %v1049_v35 = vunpack.i.h.bf16 %v1047_v32  ;;  %v597_v25 = vsel %vm321_vm0, %v1053_v31, %v1043_v30 }
 0x215   : > { %v1057_v36 = vpop.permute.xlu1 %1056  ;;  %v610_v37 = vpack.c.bf16 %v594_v34, %v593_v33  ;;  %v598_v27 = vsel %vm321_vm0, %v1054_v7, %v1044_v29  ;;  %v1048_v40 = vunpack.i.l.bf16 %v1047_v32 }
 0x216   : > { %v1059_v41 = vunpack.i.h.bf16 %v1057_v36  ;;  %v1058_v42 = vunpack.i.l.bf16 %v1057_v36  ;;  %v984_v43 = vpack.c.bf16 %v598_v27, %v597_v25 }
 0x217   : > { %641 = vmatprep.subr.bf16.mxu1 %v610_v37  ;;  %v1062_v44 = vpop.permute.xlu0 %1061 }
 0x218   : > { %v595_v45 = vsel %vm321_vm0, %v1058_v42, %v1048_v40  ;;  %v596_v46 = vsel %vm321_vm0, %v1059_v41, %v1049_v35  ;;  %985 = vmatpush1.bf16.msk.msra.mxu1 %vm1274_vm5, %v984_v43  ;;  %v1064_v47 = vunpack.i.h.bf16 %v1062_v44  ;;  %v591_v49 = vsel %vm321_vm0, %v1048_v40, %v1058_v42 }
 0x219   : > { %v987_v26 = vpack.c.bf16 %v596_v46, %v595_v45  ;;  %v1072_v48 = vpop.permute.xlu1 %1071  ;;  %v592_v50 = vsel %vm321_vm0, %v1049_v35, %v1059_v41  ;;  %v1063_v51 = vunpack.i.l.bf16 %v1062_v44  ;;  %v286_v46 = vld [vmem:[%s1170_s29 + $0x10] sm:$0xff] }
 0x21a   : > { %v1074_v52 = vunpack.i.h.bf16 %v1072_v48  ;;  %v1073_v53 = vunpack.i.l.bf16 %v1072_v48  ;;  %v608_v54 = vpack.c.bf16 %v592_v50, %v591_v49  ;;  %v287_v49 = vld [vmem:[%s1170_s29 + $0x18] sm:$0xff] }
 0x21b   : > { %v1067_v55 = vpop.permute.xlu0 %1066 }
 0x21c   : > { %v755_v56 = vsel %vm418_vm2, %v1063_v51, %v1073_v53  ;;  %v756_v57 = vsel %vm418_vm2, %v1064_v47, %v1074_v52  ;;  %v759_v58 = vsel %vm418_vm2, %v1073_v53, %v1063_v51  ;;  %v760_v59 = vsel %vm418_vm2, %v1074_v52, %v1064_v47  ;;  %643 = vmatprep.subr.bf16.mxu1 %v608_v54 }
 0x21d   : > { %v771_v63 = vpack.c.bf16 %v756_v57, %v755_v56  ;;  %v998_v0 = vpack.c.bf16 %v760_v59, %v759_v58  ;;  %988 = vmatpush1.bf16.msk.msra.mxu1 %vm1274_vm5, %v987_v26  ;;  %v1077_v2 = vpop.permute.xlu1 %1076  ;;  %v1069_v3 = vunpack.i.h.bf16 %v1067_v55  ;;  %v1068_v5 = vunpack.i.l.bf16 %v1067_v55 }
 0x21e   : > { %v1079_v8 = vunpack.i.h.bf16 %v1077_v2  ;;  %v1078_v9 = vunpack.i.l.bf16 %v1077_v2  ;;  %699 = vmatprep.subr.bf16.mxu1 %v678_v18 }
 0x21f   : > { %999 = vmatprep.subr.msk.bf16.mxu0 %vm1302_vm6, %v998_v0 }
 0x220   : > { %v753_v38 = vsel %vm418_vm2, %v1068_v5, %v1078_v9  ;;  %v754_v10 = vsel %vm418_vm2, %v1069_v3, %v1079_v8  ;;  %v757_v11 = vsel %vm418_vm2, %v1078_v9, %v1068_v5  ;;  %v758_v12 = vsel %vm418_vm2, %v1079_v8, %v1069_v3  ;;  %989 = vmatmul.mubr.msk.bf16.vlgmr.msra.gmra.mxu1 %vm505_vm4, %v1082_v60 }
 0x221   : > { %v769_v13 = vpack.c.bf16 %v754_v10, %v753_v38  ;;  %v1001_v4 = vpack.c.bf16 %v758_v12, %v757_v11  ;;  %700 = vmatpush1.bf16.msra.mxu1 %v1247_v14  ;;  %794 = vmatpush1.bf16.msra.mxu0 %v771_v63 }
 0x222   : > { %701 = vmatprep.subr.bf16.mxu1 %v1245_v6  ;;  %719 = vmatprep.mubr.bf16.mxu1 %v1106_v1 }
 0x223   : > { %1002 = vmatprep.subr.msk.bf16.mxu0 %vm1302_vm6, %v1001_v4 }
 0x225   : > { %702 = vmatpush1.bf16.msra.mxu1 %v1243_v61  ;;  %796 = vmatpush1.bf16.msra.mxu0 %v769_v13 }
 0x228   : > { %993 = vmatmul.mubr.msk.bf16.vlgmr.msra.gmra.mxu1 %vm505_vm4, %v1083_v15  ;;  %1003 = vmatmul.mubr.msk.bf16.vlgmr.msra.gmra.mxu0 %vm505_vm4, %v1084_v23  ;;  %v614_v16 = vpop.permute.xlu0 %613 }
 0x22c   : > { %v619_v27 = vpop.permute.xlu0 %618 }
 0x2e0   : > { %v663_v6 = vpop.f32.mrf.mxu1 }
 0x2e1   : > { %v664_v18 = vadd.f32 %v663_v6, %v614_v16 }
 0x2e2   : > { %v665_v1 = vpop.f32.mrf.mxu1 }
 0x2e3   : > { %v666_v21 = vadd.f32 %v665_v1, %v614_v16 }
 0x2e4   : > { %v667_v14 = vpop.f32.mrf.mxu1 }
 0x2e5   : > { %v668_v39 = vadd.f32 %v667_v14, %v619_v27 }
 0x2e6   : > { %v669_v17 = vpop.f32.mrf.mxu1 }
 0x2e7   : > { %v670_v41 = vadd.f32 %v669_v17, %v619_v27 }
 0x2e8   : > { %v721_v19 = vpop.f32.mrf.mxu1  ;;  %v815_v20 = vpop.f32.mrf.mxu0 }
 0x2e9   : > { %v730_v22 = vadd.f32 %v721_v19, %v664_v18 }
 0x2ea   : > { %v723_v24 = vpop.f32.mrf.mxu1  ;;  %v817_v30 = vpop.f32.mrf.mxu0 }
 0x2eb   : > { %v731_v28 = vadd.f32 %v723_v24, %v666_v21  ;;  %v824_v29 = vadd.f32 %v815_v20, %v730_v22 }
 0x2ec   : > { %v725_v25 = vpop.f32.mrf.mxu1  ;;  %v819_v43 = vpop.f32.mrf.mxu0 }
 0x2ed   : > { %v828_v61 = vadd.f32 2.0, %v824_v29  ;;  %v825_v7 = vadd.f32 %v817_v30, %v731_v28  ;;  %v732_v42 = vadd.f32 %v725_v25, %v668_v39 }
 0x2ee   : > { %v727_v40 = vpop.f32.mrf.mxu1  ;;  %v821_v26 = vpop.f32.mrf.mxu0 }
 0x2ef   : > { %v1004_v31 = vmul.f32 -1.442695, %v828_v61  ;;  %v829_v32 = vadd.f32 2.0, %v825_v7  ;;  %v733_v44 = vadd.f32 %v727_v40, %v670_v41  ;;  %v826_v45 = vadd.f32 %v819_v43, %v732_v42 }
 0x2f1   : > { %1085 = vpow2.f32 %v1004_v31  ;;  %v1005_v33 = vmul.f32 -1.442695, %v829_v32  ;;  %v827_v47 = vadd.f32 %v821_v26, %v733_v44  ;;  %v844_v51 = vadd.f32 %v826_v45, %v286_v46 }
 0x2f3   : > { %1087 = vpow2.f32 %v1005_v33  ;;  %v845_v55 = vadd.f32 %v827_v47, %v287_v49 }
 0x2fe   : > { %v1086_v34 = vpop.eup %1085 }
 0x2ff   : > { %v836_v35 = vadd.f32 1.0, %v1086_v34 }
 0x300   : > { %v1088_v36 = vpop.eup %1087 }
 0x301   : > { %1089 = vrcp.f32 %v836_v35  ;;  %v837_v37 = vadd.f32 1.0, %v1088_v36 }
 0x303   : > { %1091 = vrcp.f32 %v837_v37 }
 0x30e   : > { %v1090_v48 = vpop.eup %1089 }
 0x30f   : > { %v842_v50 = vadd.f32 1e-07, %v1090_v48 }
 0x310   : > { %v1092_v52 = vpop.eup %1091 }
 0x311   : > { %v846_v53 = vmul.f32 %v844_v51, %v842_v50  ;;  %v843_v54 = vadd.f32 1e-07, %v1092_v52  ;;  %1093 = vlog2.f32 %v842_v50 }
 0x313   : > { %v847_v56 = vmul.f32 %v845_v55, %v843_v54  ;;  %1006 = vst [vmem:[%s919_s12 + $0x10] sm:$0xff] %v846_v53  ;;  %1095 = vlog2.f32 %v843_v54 }
 0x315   : > { %1007 = vst [vmem:[%s919_s12 + $0x18] sm:$0xff] %v847_v56 }
 0x31e   : > { %v1094_v57 = vpop.eup %1093 }
 0x31f   : > { %v851_v59 = vmul.f32 0.6931472, %v1094_v57 }
 0x320   : > { %v1096_v58 = vpop.eup %1095 }
 0x321   : > { %v853_v60 = vmul.f32 0.6931472, %v1096_v58 }
 0x323   : > { %v854_v62 = vadd.f32 %v853_v60, %v851_v59 }
 0x325   : > { %855 = vadd.xlane.f32.xlu1 %v854_v62 }
 0x3ae   : > { %v856_v63 = vpop.xlane.xlu1 %855 }
 0x3af   : > { %v857_v0 = vrot.slane %v856_v63, 4 }
 0x3b1   : > { %v858_v2 = vadd.f32 %v857_v0, %v856_v63 }
 0x3b3   : > { %v859_v3 = vrot.slane %v858_v2, 2 }
 0x3b5   : > { %v860_v5 = vadd.f32 %v859_v3, %v858_v2 }
 0x3b7   : > { %v861_v8 = vrot.slane %v860_v5, 1 }
 0x3b9   : > { %v862_v9 = vadd.f32 %v861_v8, %v860_v5 }
 0x3bb   : > { %864 = vst.msk [vmem:[%s282_s13] sm:$0x1] %vm863_vm7, %v862_v9 }
 0x3bc PF: > { %s17_s21 = sadd.s32 1, %s1103_s21  }
 0x3bd   : > { %p14_p4 = scmp.ge.s32.totalorder %s17_s21, 4  }
 0x3bf   :  { %16 = sbr.rel (!%p14_p4) target bundleno = 1 (0x1), region = 87 }

</bundles_post_ra>
